<compile_context>
chip_gen: v7x
topology: tpu7x:2x2x1
jax: 0.10.0
libtpu: 0.0.40
codegen_flags: <defaults>
</compile_context>

<pallas_src>
import functools

import jax
import jax.numpy as jnp
from jax import lax
from jax.experimental import pallas as pl
from jax.experimental.pallas import tpu as pltpu

LEAKY_SLOPE = 0.01  # PyTorch F.leaky_relu default negative_slope


def _critic_kernel(x_ref, w1_ref, b1_ref, w4_ref, b4_ref, w5_ref, b5_ref, o_ref,
                   *, chunk):
    """One batch tile.  x_ref: (tb, input_width) f32; o_ref: (1, tb) f32."""
    # Weights/biases are tiny; read them once per grid step.
    w1 = w1_ref[...]              # (dim, input_width)
    b1 = b1_ref[...]              # (dim, 1)
    w4 = w4_ref[...]              # (dim, dim)
    b4 = b4_ref[...]              # (dim, 1)
    w5 = w5_ref[...]              # (1, dim)
    b5 = b5_ref[0, 0]             # scalar (SMEM)

    tb = x_ref.shape[0]
    n_chunks = tb // chunk        # static

    def compute_chunk(start):
        xc = x_ref[pl.ds(start, chunk), :]                       # (chunk, in)
        # fc_1: contract input_width of both operands -> (dim, chunk);
        # the batch ends up on the lane axis (lane-dense epilogues & stores).
        h = lax.dot_general(w1, xc, (((1,), (1,)), ((), ())),
                            preferred_element_type=jnp.float32)
        h = h + b1
        h = jnp.maximum(h, LEAKY_SLOPE * h)                      # leaky_relu
        # fc_4: (dim, dim) @ (dim, chunk)
        h = jnp.dot(w4, h, preferred_element_type=jnp.float32) + b4
        h = jnp.maximum(h, LEAKY_SLOPE * h)
        # fc_5 on the MXU: (1, dim) @ (dim, chunk) -> (1, chunk)
        out = jnp.dot(w5, h, preferred_element_type=jnp.float32) + b5
        o_ref[:, pl.ds(start, chunk)] = out

    if n_chunks == 1:
        compute_chunk(0)          # fully static path for small tiles
    else:
        # fori_loop (not an unrolled Python loop) bounds vreg live ranges so a
        # large batch tile never spills; chunk starts are 128-aligned.
        def body(c, carry):
            compute_chunk(pl.multiple_of(c * chunk, chunk))
            return carry
        lax.fori_loop(0, n_chunks, body, 0)


def _round_up(n, m):
    return ((n + m - 1) // m) * m


def _choose_tile(batch, block_b):
    """Batch-tile width (multiple of 128): round_up(ceil(B/k), 128) for the
    smallest k >= 2 with tile <= block_b, so padding stays small and the grid
    has >= 2 'parallel' steps for v7x's two TensorCores."""
    if batch <= 128:
        return 128
    k = 2
    while True:
        tb = _round_up(-(-batch // k), 128)
        if tb <= block_b:
            return tb
        k += 1


def critic_forward(x, params, *, block_b=8192, chunk_b=512):
    """x: (B, input_width) float32 -> (B, 1) float32.

    params: PyTorch-layout (w: (out, in), b: (out,)) float32 arrays.
    block_b: max batch-tile width per grid step (multiple of 128).
    chunk_b: max inner lane-chunk width (multiple of 128).
    """
    w1, b1, w4, b4, w5, b5 = params
    B, input_width = x.shape
    dim = w1.shape[0]
    assert block_b % 128 == 0 and chunk_b % 128 == 0

    tb = _choose_tile(B, block_b)
    n_tiles = -(-B // tb)
    b_pad = n_tiles * tb
    # Largest inner lane-chunk (<= chunk_b) that divides the tile.
    chunk = max(c for c in (1024, 512, 256, 128)
                if c <= min(chunk_b, tb) and tb % c == 0)

    if b_pad != B:   # pad only when needed; padded rows are sliced off below
        x = jnp.pad(x, ((0, b_pad - B), (0, 0)))

    b1c = b1.reshape(dim, 1)
    b4c = b4.reshape(dim, 1)
    w5r = w5.reshape(1, dim)
    b5s = b5.reshape(1, 1)

    out = pl.pallas_call(
        functools.partial(_critic_kernel, chunk=chunk),
        out_shape=jax.ShapeDtypeStruct((1, b_pad), jnp.float32),
        grid=(n_tiles,),
        in_specs=[
            pl.BlockSpec((tb, input_width), lambda i: (i, 0)),    # x tile
            pl.BlockSpec((dim, input_width), lambda i: (0, 0)),   # W1 (resident)
            pl.BlockSpec((dim, 1), lambda i: (0, 0)),             # b1
            pl.BlockSpec((dim, dim), lambda i: (0, 0)),           # W4
            pl.BlockSpec((dim, 1), lambda i: (0, 0)),             # b4
            pl.BlockSpec((1, dim), lambda i: (0, 0)),             # W5 row
            pl.BlockSpec(memory_space=pltpu.MemorySpace.SMEM),    # b5 scalar
        ],
        out_specs=pl.BlockSpec((1, tb), lambda i: (0, i)),        # lane-dense
        compiler_params=pltpu.CompilerParams(
            dimension_semantics=("parallel",),
        ),
    )(x, w1, b1c, w4, b4c, w5r, b5s)

    return out[0, :B].reshape(B, 1)


def init_critic_params(key, input_width, dimensionality):
    """PyTorch nn.Linear layout: w (out, in), b (out,); uniform(+-1/sqrt(fan_in))."""
    ks = jax.random.split(key, 6)

    def linear(kw, kb, fan_in, fan_out):
        bound = 1.0 / (fan_in ** 0.5)
        w = jax.random.uniform(kw, (fan_out, fan_in), jnp.float32, -bound, bound)
        b = jax.random.uniform(kb, (fan_out,), jnp.float32, -bound, bound)
        return w, b

    w1, b1 = linear(ks[0], ks[1], input_width, dimensionality)
    w4, b4 = linear(ks[2], ks[3], dimensionality, dimensionality)
    w5, b5 = linear(ks[4], ks[5], dimensionality, 1)
    return (w1, b1, w4, b4, w5, b5)


def critic_reference(x, params):
    """Pure-JAX f32 reference with full-precision dots (module semantics)."""
    w1, b1, w4, b4, w5, b5 = params
    hp = jax.lax.Precision.HIGHEST
    h = jnp.dot(x, w1.T, precision=hp) + b1
    h = jnp.where(h > 0, h, LEAKY_SLOPE * h)
    h = jnp.dot(h, w4.T, precision=hp) + b4
    h = jnp.where(h > 0, h, LEAKY_SLOPE * h)
    return jnp.dot(h, w5.T, precision=hp) + b5


if __name__ == "__main__":
    key = jax.random.PRNGKey(0)
    k_p, k_x1, k_x2 = jax.random.split(key, 3)

    input_width = 16
    dimensionality = 32
    params = init_critic_params(k_p, input_width, dimensionality)

    fwd = jax.jit(critic_forward)

    # Case 1: B=300 -> tb=256, 2 grid steps, single static chunk, lane padding.
    x1 = jax.random.normal(k_x1, (300, input_width), dtype=jnp.float32)
    out1 = jax.block_until_ready(fwd(x1, params))
    assert out1.shape == (300, 1), out1.shape
    ref1 = critic_reference(x1, params)
    err1 = float(jnp.max(jnp.abs(out1 - ref1)))
    assert jnp.allclose(out1, ref1, atol=5e-3, rtol=5e-3), err1

    # Case 2: B=1536 -> tb=768, 2 grid steps, 3 dynamic 256-lane chunks, no pad.
    x2 = jax.random.normal(k_x2, (1536, input_width), dtype=jnp.float32)
    out2 = jax.block_until_ready(fwd(x2, params))
    assert out2.shape == (1536, 1), out2.shape
    ref2 = critic_reference(x2, params)
    err2 = float(jnp.max(jnp.abs(out2 - ref2)))
    assert jnp.allclose(out2, ref2, atol=5e-3, rtol=5e-3), err2

    print("KERNEL_OK")
</pallas_src>

<mosaic_0001>
module attributes {stable_mosaic.version = 11 : i64} {
  func.func @_critic_kernel(%arg0: i32, %arg1: memref<256x16xf32, #tpu.memory_space<vmem>>, %arg2: memref<32x16xf32, #tpu.memory_space<vmem>>, %arg3: memref<32x1xf32, #tpu.memory_space<vmem>>, %arg4: memref<32x32xf32, #tpu.memory_space<vmem>>, %arg5: memref<32x1xf32, #tpu.memory_space<vmem>>, %arg6: memref<1x32xf32, #tpu.memory_space<vmem>>, %arg7: memref<1x1xf32, #tpu.memory_space<smem>>, %arg8: memref<1x256xf32, #tpu.memory_space<vmem>>) attributes {dimension_semantics = [#tpu.dimension_semantics<parallel>], iteration_bounds = array<i64: 2>, scalar_prefetch = 0 : i64, scratch_operands = 0 : i64, tpu.core_type = #tpu.core_type<tc>, window_params = [{transform_indices = @transform_0, window_bounds = array<i64: 256, 16>}, {pipeline_mode = #tpu.pipeline_mode<synchronous>, transform_indices = @transform_1, window_bounds = array<i64: 32, 16>}, {pipeline_mode = #tpu.pipeline_mode<synchronous>, transform_indices = @transform_2, window_bounds = array<i64: 32, 1>}, {pipeline_mode = #tpu.pipeline_mode<synchronous>, transform_indices = @transform_3, window_bounds = array<i64: 32, 32>}, {pipeline_mode = #tpu.pipeline_mode<synchronous>, transform_indices = @transform_4, window_bounds = array<i64: 32, 1>}, {pipeline_mode = #tpu.pipeline_mode<synchronous>, transform_indices = @transform_5, window_bounds = array<i64: 1, 32>}, {transform_indices = @transform_6, window_bounds = array<i64: 1, 1>}, {transform_indices = @transform_7, window_bounds = array<i64: 1, 256>}]} {
    %c0 = arith.constant 0 : index
    %c0_0 = arith.constant 0 : index
    %0 = vector.load %arg2[%c0, %c0_0] : memref<32x16xf32, #tpu.memory_space<vmem>>, vector<32x16xf32>
    %c0_1 = arith.constant 0 : index
    %c0_2 = arith.constant 0 : index
    %1 = vector.load %arg3[%c0_1, %c0_2] : memref<32x1xf32, #tpu.memory_space<vmem>>, vector<32x1xf32>
    %c0_3 = arith.constant 0 : index
    %c0_4 = arith.constant 0 : index
    %2 = vector.load %arg4[%c0_3, %c0_4] : memref<32x32xf32, #tpu.memory_space<vmem>>, vector<32x32xf32>
    %c0_5 = arith.constant 0 : index
    %c0_6 = arith.constant 0 : index
    %3 = vector.load %arg5[%c0_5, %c0_6] : memref<32x1xf32, #tpu.memory_space<vmem>>, vector<32x1xf32>
    %c0_7 = arith.constant 0 : index
    %c0_8 = arith.constant 0 : index
    %4 = vector.load %arg6[%c0_7, %c0_8] : memref<1x32xf32, #tpu.memory_space<vmem>>, vector<1x32xf32>
    %c0_9 = arith.constant 0 : index
    %c0_10 = arith.constant 0 : index
    %5 = memref.load %arg7[%c0_9, %c0_10] : memref<1x1xf32, #tpu.memory_space<smem>>
    %c0_11 = arith.constant 0 : index
    %c0_12 = arith.constant 0 : index
    %6 = vector.load %arg1[%c0_11, %c0_12] : memref<256x16xf32, #tpu.memory_space<vmem>>, vector<256x16xf32>
    %cst = arith.constant dense<0.000000e+00> : vector<32x256xf32>
    %7 = tpu.matmul %0, %6, %cst {dimension_numbers = #tpu.dot_dimension_numbers<[1], [1], [0], [0], [0, 0, 1, 0], [], []>} : vector<32x16xf32>, vector<256x16xf32>, vector<32x256xf32> -> vector<32x256xf32>
    %8 = vector.broadcast %1 : vector<32x1xf32> to vector<32x256xf32>
    %9 = arith.addf %7, %8 : vector<32x256xf32>
    %cst_13 = arith.constant 0.00999999977 : f32
    %10 = vector.broadcast %cst_13 : f32 to vector<32x256xf32>
    %11 = arith.mulf %10, %9 : vector<32x256xf32>
    %12 = arith.maximumf %9, %11 : vector<32x256xf32>
    %cst_14 = arith.constant dense<0.000000e+00> : vector<32x256xf32>
    %13 = tpu.matmul %2, %12, %cst_14 {dimension_numbers = #tpu.dot_dimension_numbers<[1], [0], [0], [1], [0, 0, 1, 1], [], []>} : vector<32x32xf32>, vector<32x256xf32>, vector<32x256xf32> -> vector<32x256xf32>
    %14 = vector.broadcast %3 : vector<32x1xf32> to vector<32x256xf32>
    %15 = arith.addf %13, %14 : vector<32x256xf32>
    %cst_15 = arith.constant 0.00999999977 : f32
    %16 = vector.broadcast %cst_15 : f32 to vector<32x256xf32>
    %17 = arith.mulf %16, %15 : vector<32x256xf32>
    %18 = arith.maximumf %15, %17 : vector<32x256xf32>
    %cst_16 = arith.constant dense<0.000000e+00> : vector<1x256xf32>
    %19 = tpu.matmul %4, %18, %cst_16 {dimension_numbers = #tpu.dot_dimension_numbers<[1], [0], [0], [1], [0, 0, 1, 1], [], []>} : vector<1x32xf32>, vector<32x256xf32>, vector<1x256xf32> -> vector<1x256xf32>
    %20 = vector.broadcast %5 : f32 to vector<1x256xf32>
    %21 = arith.addf %19, %20 : vector<1x256xf32>
    %c0_17 = arith.constant 0 : index
    %c0_18 = arith.constant 0 : index
    %22 = vector.load %arg8[%c0_17, %c0_18] : memref<1x256xf32, #tpu.memory_space<vmem>>, vector<1x256xf32>
    tpu.vector_store %arg8[%c0_17, %c0_18], %21 {strides = array<i32>} : memref<1x256xf32, #tpu.memory_space<vmem>>, vector<1x256xf32>,
    return
  }
  func.func @transform_0(%arg0: i32) -> (i32, i32) {
    %c0_i32 = arith.constant 0 : i32
    %c0_i32_0 = arith.constant 0 : i32
    return %arg0, %c0_i32 : i32, i32
  }
  func.func @transform_1(%arg0: i32) -> (i32, i32) {
    %c0_i32 = arith.constant 0 : i32
    %c0_i32_0 = arith.constant 0 : i32
    %c0_i32_1 = arith.constant 0 : i32
    return %c0_i32, %c0_i32_0 : i32, i32
  }
  func.func @transform_2(%arg0: i32) -> (i32, i32) {
    %c0_i32 = arith.constant 0 : i32
    %c0_i32_0 = arith.constant 0 : i32
    %c0_i32_1 = arith.constant 0 : i32
    return %c0_i32, %c0_i32_0 : i32, i32
  }
  func.func @transform_3(%arg0: i32) -> (i32, i32) {
    %c0_i32 = arith.constant 0 : i32
    %c0_i32_0 = arith.constant 0 : i32
    %c0_i32_1 = arith.constant 0 : i32
    return %c0_i32, %c0_i32_0 : i32, i32
  }
  func.func @transform_4(%arg0: i32) -> (i32, i32) {
    %c0_i32 = arith.constant 0 : i32
    %c0_i32_0 = arith.constant 0 : i32
    %c0_i32_1 = arith.constant 0 : i32
    return %c0_i32, %c0_i32_0 : i32, i32
  }
  func.func @transform_5(%arg0: i32) -> (i32, i32) {
    %c0_i32 = arith.constant 0 : i32
    %c0_i32_0 = arith.constant 0 : i32
    %c0_i32_1 = arith.constant 0 : i32
    return %c0_i32, %c0_i32_0 : i32, i32
  }
  func.func @transform_6(%arg0: i32) -> (i32, i32) {
    %c0_i32 = arith.constant 0 : i32
    %c0_i32_0 = arith.constant 0 : i32
    %c0_i32_1 = arith.constant 0 : i32
    return %c0_i32, %c0_i32_0 : i32, i32
  }
  func.func @transform_7(%arg0: i32) -> (i32, i32) {
    %c0_i32 = arith.constant 0 : i32
    %c0_i32_0 = arith.constant 0 : i32
    return %c0_i32, %arg0 : i32, i32
  }
}

</mosaic_0001>

<bundles_post_ra>
// kernel: critic_forward.1
= control target key start
LH: loop header
LB: loop body
LE: loop exit
PB: predicated region body
PF: predicated region fallthrough
CT: control target
= control target key end

     0   :  { %s1073_s26 = smov 0   ;;  %s1234_s0 = inlined_call_operand.vmem [shape: f32[512,16], index: 0, kind: input, shape index: {}]   ;;  %s1235_s1 = inlined_call_operand.vmem [shape: f32[32,16], index: 1, kind: input, shape index: {}]   ;;  %s1236_s2 = inlined_call_operand.vmem [shape: f32[32,1], index: 2, kind: input, shape index: {}]   ;;  %s1237_s3 = inlined_call_operand.vmem [shape: f32[32,32], index: 3, kind: input, shape index: {}]   ;;  %s1238_s4 = inlined_call_operand.vmem [shape: f32[32,1], index: 4, kind: input, shape index: {}]   ;;  %s1239_s5 = inlined_call_operand.vmem [shape: f32[1,32], index: 5, kind: input, shape index: {}]   ;;  %s1240_s6 = inlined_call_operand.<no memory space> [shape: f32[1,1], index: 6, kind: input, shape index: {}]   ;;  %s1241_s7 = inlined_call_operand.vmem [shape: f32[1,512], index: 7, kind: output, shape index: {}]  }
   0x1   :  { %12 = sst [smem:[#allocation2]] %s1240_s6 }
   0x2 LB: > { %s851_s27 = sadd.s32 4294967295, %s1025_s26   ;;  %p855_p0 = scmp.ge.s32.totalorder %s1025_s26, 1  ;;  %s1025_s26 = sphi %s1073_s26, %s18_s26  }
   0x3   : > { %p239_p1 = scmp.lt.s32.totalorder %s1025_s26, 3 }
   0x5   : > { %p240_p2 = pnand %p855_p0, %p239_p1 }
   0x6   : > { %s856_s28 = sshll.u32 (!%p240_p2), %s851_s27, 5  ;;  %vm351_vm0 = vcmask (!%p240_p2), 130048   ;;  %v1086_v0 = vld [vmem:[%s1235_s1] sm:$0xff] (!%p240_p2)  ;;  %v1027_v1 = vmov (!%p240_p2), 0   ;;  %v287_v3 = vld [vmem:[%s1236_s2 + $0x10] sm:$0xff] (!%p240_p2)  ;;  %v286_v4 = vld [vmem:[%s1236_s2 + $0x8] sm:$0xff] (!%p240_p2) }
   0x7   : > { %243 = sbr.rel (%p240_p2) target bundleno = 780 (0x30c), region = 48  ;;  %p271_p3 = scmp.lt.s32.totalorder (!%p240_p2), %s856_s28, 63  ;;  %934 = vmatprep.mubr.msk.f32.mxu0 (!%p240_p2), %vm351_vm0, %v1086_v0  ;;  %1017 = vset.pattern.permute.xlu0 (!%p240_p2), %v1027_v1  ;;  %v285_v2 = vld [vmem:[%s1236_s2] sm:$0xff] (!%p240_p2)  ;;  %v288_v5 = vld [vmem:[%s1236_s2 + $0x18] sm:$0xff] (!%p240_p2)  ;;  %vm1109_vm1 = vmpackc.low (!%p240_p2), %vm351_vm0, %vm351_vm0  ;;  %v1028_v62 = vmov (!%p240_p2), 0.0   ;;  %vm585_vm2 = vcmask (!%p240_p2), 261120  }
   0x8   : > { %333 = vperm.xlu0 (!%p240_p2), %1017, %v285_v2   ;;  %1018 = vset.pattern.permute.xlu1 (!%p240_p2), %v1027_v1  ;;  %v293_v7 = vld [vmem:[%s1238_s4] sm:$0xff] (!%p240_p2)  ;;  %v294_v8 = vld [vmem:[%s1238_s4 + $0x8] sm:$0xff] (!%p240_p2)  ;;  %v295_v18 = vld [vmem:[%s1238_s4 + $0x10] sm:$0xff] (!%p240_p2)  ;;  %s298_s21 = sld [smem:[#allocation2]] (!%p240_p2)  ;;  %s858_s22 = sshll.u32 (!%p240_p2), %s851_s27, 1 }
   0x9   : > { %343 = vperm.xlu1 (!%p240_p2), %1018, %v287_v3   ;;  %v296_v21 = vld [vmem:[%s1238_s4 + $0x18] sm:$0xff] (!%p240_p2)  ;;  %v282_v59 = vld [vmem:[%s1235_s1 + $0x8] sm:$0xff] (!%p240_p2)  ;;  %v283_v60 = vld [vmem:[%s1235_s1 + $0x10] sm:$0xff] (!%p240_p2)  ;;  %662 = vmatprep.mubr.f32.mxu1 (!%p240_p2), %v1028_v62  ;;  %p277_p4 = scmp.lt.s32.totalorder (!%p240_p2), %s858_s22, 3 }
   0xa   : > { %v284_v61 = vld [vmem:[%s1235_s1 + $0x18] sm:$0xff] (!%p240_p2) }
   0xc   : > { %338 = vperm.xlu0 (!%p240_p2), %1017, %v286_v4  }
   0xd   : > { %348 = vperm.xlu1 (!%p240_p2), %1018, %v288_v5  }
   0xe   : > { %s1245_s28 = smov (!%p271_p3, %s856_s28), 63  ;;  %s1247_s22 = smov (!%p277_p4, %s858_s22), 3 }
   0xf   : > { %s857_s15 = sshll.u32 %s1245_s28, 3  ;;  %s279_s25 = scalar_lea.vmem %s1241_s7, %s1247_s22 }
  0x10   : > { %s1105_s18 = scalar_lea.vmem %s1234_s0, %s857_s15  ;;  %567 = vperm.xlu0 %1017, %v293_v7  }
  0x11   : > { %v315_v9 = vld [vmem:[%s1105_s18 + $0x80] sm:$0xff]  ;;  %v316_v10 = vld [vmem:[%s1105_s18 + $0x88] sm:$0xff]  ;;  %v317_v14 = vld [vmem:[%s1105_s18 + $0x90] sm:$0xff]  ;;  %572 = vperm.xlu1 %1018, %v294_v8  }
  0x12   : > { %v299_v11 = vld [vmem:[%s1105_s18] sm:$0xff]  ;;  %v942_v12 = vpack.c.bf16 %v316_v10, %v315_v9  ;;  %v300_v13 = vld [vmem:[%s1105_s18 + $0x8] sm:$0xff]  ;;  %v318_v15 = vld [vmem:[%s1105_s18 + $0x98] sm:$0xff] }
  0x13   : > { %v945_v16 = vpack.c.bf16 %v300_v13, %v299_v11  ;;  %v948_v17 = vpack.c.bf16 %v318_v15, %v317_v14  ;;  %v301_v19 = vld [vmem:[%s1105_s18 + $0x10] sm:$0xff]  ;;  %v302_v20 = vld [vmem:[%s1105_s18 + $0x18] sm:$0xff]  ;;  %v319_v22 = vld [vmem:[%s1105_s18 + $0xa0] sm:$0xff] }
  0x14   : > { %944 = vmatprep.subr.msk.bf16.mxu0 %vm1109_vm1, %v942_v12  ;;  %v320_v23 = vld [vmem:[%s1105_s18 + $0xa8] sm:$0xff]  ;;  %577 = vperm.xlu0 %1017, %v295_v18   ;;  %v951_v24 = vpack.c.bf16 %v302_v20, %v301_v19  ;;  %v303_v26 = vld [vmem:[%s1105_s18 + $0x20] sm:$0xff]  ;;  %v321_v28 = vld [vmem:[%s1105_s18 + $0xb0] sm:$0xff] }
  0x15   : > { %947 = vmatpush3.bf16.xpose.msk.msra.mxu0 %vm1109_vm1, %v945_v16  ;;  %582 = vperm.xlu1 %1018, %v296_v21   ;;  %v954_v25 = vpack.c.bf16 %v320_v23, %v319_v22  ;;  %v304_v27 = vld [vmem:[%s1105_s18 + $0x28] sm:$0xff]  ;;  %v322_v29 = vld [vmem:[%s1105_s18 + $0xb8] sm:$0xff]  ;;  %v305_v32 = vld [vmem:[%s1105_s18 + $0x30] sm:$0xff] }
  0x16   : > { %950 = vmatprep.subr.msk.bf16.mxu0 %vm1109_vm1, %v948_v17  ;;  %v957_v30 = vpack.c.bf16 %v304_v27, %v303_v26  ;;  %v960_v31 = vpack.c.bf16 %v322_v29, %v321_v28  ;;  %v306_v33 = vld [vmem:[%s1105_s18 + $0x38] sm:$0xff]  ;;  %v323_v34 = vld [vmem:[%s1105_s18 + $0xc0] sm:$0xff]  ;;  %v324_v35 = vld [vmem:[%s1105_s18 + $0xc8] sm:$0xff] }
  0x17   : > { %v963_v36 = vpack.c.bf16 %v306_v33, %v305_v32  ;;  %v966_v37 = vpack.c.bf16 %v324_v35, %v323_v34  ;;  %v307_v38 = vld [vmem:[%s1105_s18 + $0x40] sm:$0xff]  ;;  %v308_v39 = vld [vmem:[%s1105_s18 + $0x48] sm:$0xff]  ;;  %v325_v40 = vld [vmem:[%s1105_s18 + $0xd0] sm:$0xff] }
  0x18   : > { %v326_v41 = vld [vmem:[%s1105_s18 + $0xd8] sm:$0xff]  ;;  %v969_v42 = vpack.c.bf16 %v308_v39, %v307_v38  ;;  %v309_v44 = vld [vmem:[%s1105_s18 + $0x50] sm:$0xff]  ;;  %v327_v46 = vld [vmem:[%s1105_s18 + $0xe0] sm:$0xff] }
  0x19   : > { %v972_v43 = vpack.c.bf16 %v326_v41, %v325_v40  ;;  %v310_v45 = vld [vmem:[%s1105_s18 + $0x58] sm:$0xff]  ;;  %v328_v47 = vld [vmem:[%s1105_s18 + $0xe8] sm:$0xff]  ;;  %v311_v50 = vld [vmem:[%s1105_s18 + $0x60] sm:$0xff] }
  0x1a   : > { %v975_v48 = vpack.c.bf16 %v310_v45, %v309_v44  ;;  %v978_v49 = vpack.c.bf16 %v328_v47, %v327_v46  ;;  %v312_v51 = vld [vmem:[%s1105_s18 + $0x68] sm:$0xff]  ;;  %v329_v52 = vld [vmem:[%s1105_s18 + $0xf0] sm:$0xff]  ;;  %v330_v53 = vld [vmem:[%s1105_s18 + $0xf8] sm:$0xff] }
  0x1b   : > { %v981_v54 = vpack.c.bf16 %v312_v51, %v311_v50  ;;  %v984_v55 = vpack.c.bf16 %v330_v53, %v329_v52  ;;  %v313_v56 = vld [vmem:[%s1105_s18 + $0x70] sm:$0xff]  ;;  %v314_v57 = vld [vmem:[%s1105_s18 + $0x78] sm:$0xff]  ;;  %v289_v39 = vld [vmem:[%s1237_s3] sm:$0xff] }
  0x1c   : > { %v987_v58 = vpack.c.bf16 %v314_v57, %v313_v56  ;;  %v290_v40 = vld [vmem:[%s1237_s3 + $0x8] sm:$0xff]  ;;  %v291_v41 = vld [vmem:[%s1237_s3 + $0x10] sm:$0xff] }
  0x1d   : > { %953 = vmatpush3.bf16.xpose.msk.msra.mxu0 %vm1109_vm1, %v951_v24 }
  0x1e   : > { %956 = vmatprep.subr.msk.bf16.mxu0 %vm1109_vm1, %v954_v25 }
  0x25   : > { %959 = vmatpush3.bf16.xpose.msk.msra.mxu0 %vm1109_vm1, %v957_v30 }
  0x26   : > { %962 = vmatprep.subr.msk.bf16.mxu0 %vm1109_vm1, %v960_v31 }
  0x2d   : > { %965 = vmatpush3.bf16.xpose.msk.msra.mxu0 %vm1109_vm1, %v963_v36 }
  0x2e   : > { %968 = vmatprep.subr.msk.bf16.mxu0 %vm1109_vm1, %v966_v37 }
  0x35   : > { %971 = vmatpush3.bf16.xpose.msk.msra.mxu0 %vm1109_vm1, %v969_v42  ;;  %v292_v42 = vld [vmem:[%s1237_s3 + $0x18] sm:$0xff] }
  0x36   : > { %974 = vmatprep.subr.msk.bf16.mxu0 %vm1109_vm1, %v972_v43 }
  0x3d   : > { %977 = vmatpush3.bf16.xpose.msk.msra.mxu0 %vm1109_vm1, %v975_v48 }
  0x3e   : > { %980 = vmatprep.subr.msk.bf16.mxu0 %vm1109_vm1, %v978_v49 }
  0x45   : > { %983 = vmatpush3.bf16.xpose.msk.msra.mxu0 %vm1109_vm1, %v981_v54 }
  0x46   : > { %986 = vmatprep.subr.msk.bf16.mxu0 %vm1109_vm1, %v984_v55 }
  0x4d   : > { %989 = vmatpush3.bf16.xpose.msk.msra.mxu0 %vm1109_vm1, %v987_v58 }
  0x54   : > { %935 = vmatmul.mubr.msk.f32.vlgmr.msra.gmra.mrb[0].mxu0 %vm351_vm0, %v1086_v0 }
  0x55   : > { %936 = vmatprep.mubr.msk.f32.mxu0 %vm351_vm0, %v282_v59 }
  0x58   : > { %937 = vmatmul.mubr.msk.f32.gmra.mrb[2].mxu0 %vm351_vm0, %v282_v59 }
  0x59   : > { %938 = vmatprep.mubr.msk.f32.mxu0 %vm351_vm0, %v283_v60 }
  0x5c   : > { %939 = vmatmul.mubr.msk.f32.gmra.mrb[4].mxu0 %vm351_vm0, %v283_v60 }
  0x5d   : > { %940 = vmatprep.mubr.msk.f32.mxu0 %vm351_vm0, %v284_v61 }
  0x60   : > { %941 = vmatmul.mubr.msk.f32.gmra.mrb[6].mxu0 %vm351_vm0, %v284_v61 }
  0x87   : > { %v334_v63 = vpop.permute.xlu0 %333 }
  0x88   : > { %v344_v9 = vpop.permute.xlu1 %343 }
  0x8b   : > { %v339_v4 = vpop.permute.xlu0 %338 }
  0x8c   : > { %v349_v23 = vpop.permute.xlu1 %348 }
  0x8f   : > { %v568_v43 = vpop.permute.xlu0 %567 }
  0x90   : > { %v573_v48 = vpop.permute.xlu1 %572 }
  0x93   : > { %v578_v56 = vpop.permute.xlu0 %577 }
 0x127   : > { %v526_v0 = vpop.f32.mrb[0].mxu0 }
 0x128   : > { %v527_v1 = vadd.f32 %v526_v0, %v334_v63  ;;  %v528_v2 = vpop.f32.mrb[1].mxu0 }
 0x129   : > { %v529_v3 = vadd.f32 %v528_v2, %v334_v63 }
 0x12a   : > { %v549_v6 = vmul.f32 0.01, %v527_v1 }
 0x12b   : > { %v532_v5 = vpop.f32.mrb[2].mxu0  ;;  %v550_v10 = vmul.f32 0.01, %v529_v3 }
 0x12c   : > { %v533_v7 = vadd.f32 %v532_v5, %v339_v4  ;;  %v534_v8 = vpop.f32.mrb[3].mxu0  ;;  %v557_v15 = vmax.f32 %v527_v1, %v549_v6 }
 0x12d   : > { %v535_v11 = vadd.f32 %v534_v8, %v339_v4  ;;  %v558_v20 = vmax.f32 %v529_v3, %v550_v10  ;;  %v583_v3 = vpop.permute.xlu1 %582 }
 0x12e   : > { %v551_v12 = vmul.f32 0.01, %v533_v7 }
 0x12f   : > { %v552_v13 = vmul.f32 0.01, %v535_v11  ;;  %v538_v14 = vpop.f32.mrb[4].mxu0 }
 0x130   : > { %v559_v16 = vmax.f32 %v533_v7, %v551_v12  ;;  %v539_v17 = vadd.f32 %v538_v14, %v344_v9  ;;  %v540_v18 = vpop.f32.mrb[5].mxu0 }
 0x131   : > { %v541_v19 = vadd.f32 %v540_v18, %v344_v9  ;;  %v560_v21 = vmax.f32 %v535_v11, %v552_v13 }
 0x132   : > { %v992_v22 = vpack.c.bf16 %v559_v16, %v557_v15  ;;  %v553_v26 = vmul.f32 0.01, %v539_v17 }
 0x133   : > { %v544_v24 = vpop.f32.mrb[6].mxu0  ;;  %v990_v25 = vpack.c.bf16 %v560_v21, %v558_v20  ;;  %v554_v29 = vmul.f32 0.01, %v541_v19  ;;  %v1029_v20 = vmov 1966171168  }
 0x134   : > { %v545_v27 = vadd.f32 %v544_v24, %v349_v23  ;;  %v546_v28 = vpop.f32.mrb[7].mxu0  ;;  %v561_v33 = vmax.f32 %v539_v17, %v553_v26  ;;  %v782_v21 = vunpack.c.l.s4 %v1029_v20 }
 0x135   : > { %v547_v30 = vadd.f32 %v546_v28, %v349_v23  ;;  %991 = vmatprep.subr.bf16.mxu1 %v990_v25  ;;  %v562_v35 = vmax.f32 %v541_v19, %v554_v29  ;;  %v297_v19 = vld [vmem:[%s1239_s5] sm:$0x1]  ;;  %v703_v23 = vstv %s298_s21 }
 0x136   : > { %v555_v31 = vmul.f32 0.01, %v545_v27  ;;  %993 = vmatpush1.bf16.msra.mxu1 %v992_v22  ;;  %v784_v22 = vlaneseq  ;;  %v783_v24 = vunpack.c.0.s8 %v782_v21 }
 0x137   : > { %v556_v32 = vmul.f32 0.01, %v547_v30 }
 0x138   : > { %v563_v34 = vmax.f32 %v545_v27, %v555_v31  ;;  %v785_v25 = vshrl.u32 %v784_v22, 7  ;;  %vm798_vm3 = vcmp.lt.s32.totalorder %v784_v22, 256 }
 0x139   : > { %v564_v36 = vmax.f32 %v547_v30, %v556_v32 }
 0x13a   : > { %v996_v37 = vpack.c.bf16 %v563_v34, %v561_v33  ;;  %v786_v30 = vsub.s32 %v783_v24, %v785_v25 }
 0x13b   : > { %v994_v38 = vpack.c.bf16 %v564_v36, %v562_v35 }
 0x13d   : > { %995 = vmatprep.subr.bf16.mxu1 %v994_v38 }
 0x13e   : > { %997 = vmatpush1.bf16.msra.mxu1 %v996_v37 }
 0x141   : > { %895 = vmatmul.mubr.msk.f32.vlgmr.msra.gmra.mrb[0].mxu1 %vm585_vm2, %v289_v39 }
 0x142   : > { %668 = vmatprep.mubr.f32.mxu1 %v1028_v62 }
 0x145   : > { %896 = vmatmul.mubr.msk.f32.gmra.mrb[2].mxu1 %vm585_vm2, %v290_v40 }
 0x146   : > { %674 = vmatprep.mubr.f32.mxu1 %v1028_v62 }
 0x149   : > { %897 = vmatmul.mubr.msk.f32.gmra.mrb[4].mxu1 %vm585_vm2, %v291_v41 }
 0x14a   : > { %680 = vmatprep.mubr.f32.mxu1 %v1028_v62 }
 0x14d   : > { %898 = vmatmul.mubr.msk.f32.gmra.mrb[6].mxu1 %vm585_vm2, %v292_v42 }
 0x14e   : > { %771 = vmatprep.mubr.f32.mxu1 %v1028_v62 }
 0x214   : > { %v664_v44 = vpop.f32.mrb[0].mxu1 }
 0x215   : > { %v665_v45 = vadd.f32 %v664_v44, %v568_v43  ;;  %v666_v46 = vpop.f32.mrb[1].mxu1 }
 0x216   : > { %v667_v47 = vadd.f32 %v666_v46, %v568_v43 }
 0x217   : > { %v687_v50 = vmul.f32 0.01, %v665_v45 }
 0x218   : > { %v670_v49 = vpop.f32.mrb[2].mxu1  ;;  %v688_v53 = vmul.f32 0.01, %v667_v47 }
 0x219   : > { %v671_v51 = vadd.f32 %v670_v49, %v573_v48  ;;  %v672_v52 = vpop.f32.mrb[3].mxu1  ;;  %v695_v59 = vmax.f32 %v665_v45, %v687_v50 }
 0x21a   : > { %v673_v54 = vadd.f32 %v672_v52, %v573_v48  ;;  %v696_v63 = vmax.f32 %v667_v47, %v688_v53 }
 0x21b   : > { %v689_v55 = vmul.f32 0.01, %v671_v51 }
 0x21c   : > { %v690_v57 = vmul.f32 0.01, %v673_v54  ;;  %v676_v58 = vpop.f32.mrb[4].mxu1 }
 0x21d   : > { %v697_v60 = vmax.f32 %v671_v51, %v689_v55  ;;  %v677_v61 = vadd.f32 %v676_v58, %v578_v56  ;;  %v678_v62 = vpop.f32.mrb[5].mxu1 }
 0x21e   : > { %v698_v0 = vmax.f32 %v673_v54, %v690_v57  ;;  %v679_v1 = vadd.f32 %v678_v62, %v578_v56 }
 0x21f   : > { %v1000_v2 = vpack.c.bf16 %v697_v60, %v695_v59  ;;  %v691_v6 = vmul.f32 0.01, %v677_v61 }
 0x220   : > { %v682_v4 = vpop.f32.mrb[6].mxu1  ;;  %v998_v5 = vpack.c.bf16 %v698_v0, %v696_v63  ;;  %v692_v9 = vmul.f32 0.01, %v679_v1 }
 0x221   : > { %v683_v7 = vadd.f32 %v682_v4, %v583_v3  ;;  %v684_v8 = vpop.f32.mrb[7].mxu1  ;;  %v699_v13 = vmax.f32 %v677_v61, %v691_v6 }
 0x222   : > { %v685_v10 = vadd.f32 %v684_v8, %v583_v3  ;;  %999 = vmatprep.subr.bf16.mxu1 %v998_v5  ;;  %v700_v15 = vmax.f32 %v679_v1, %v692_v9 }
 0x223   : > { %v693_v11 = vmul.f32 0.01, %v683_v7  ;;  %1001 = vmatpush1.bf16.msra.mxu1 %v1000_v2 }
 0x224   : > { %v694_v12 = vmul.f32 0.01, %v685_v10 }
 0x225   : > { %v701_v14 = vmax.f32 %v683_v7, %v693_v11 }
 0x226   : > { %v702_v16 = vmax.f32 %v685_v10, %v694_v12 }
 0x227   : > { %v1004_v17 = vpack.c.bf16 %v701_v14, %v699_v13 }
 0x228   : > { %v1002_v18 = vpack.c.bf16 %v702_v16, %v700_v15 }
 0x22a   : > { %1003 = vmatprep.subr.bf16.mxu1 %v1002_v18 }
 0x22b   : > { %1005 = vmatpush1.bf16.msra.mxu1 %v1004_v17 }
 0x22e   : > { %899 = vmatmul.mubr.msk.f32.vlgmr.msra.gmra.mrb[8].mxu1 %vm585_vm2, %v297_v19 }
 0x301   : > { %v773_v26 = vpop.f32.mrb[8].mxu1 }
 0x302   : > { %v774_v27 = vadd.f32 %v773_v26, %v703_v23  ;;  %v775_v28 = vpop.f32.mrb[9].mxu1 }
 0x303   : > { %v776_v29 = vadd.f32 %v775_v28, %v703_v23 }
 0x305   : > { %v780_v31 = vcombine.low %v774_v27, %v776_v29 }
 0x307   : > { %v787_v32 = vrot.slane %v780_v31, %v786_v30 }
 0x309   : > { %v794_v33 = vrot.slane %v787_v32, %v786_v30 }
 0x30b   : > { %800 = vst.msk [vmem:[%s279_s25] sm:$0x3] %vm798_vm3, %v794_v33 }
 0x30c PF: > { %s18_s26 = sadd.s32 1, %s1025_s26  }
 0x30d   : > { %p15_p5 = scmp.ge.s32.totalorder %s18_s26, 4  }
 0x30f   :  { %17 = sbr.rel (!%p15_p5) target bundleno = 2 (0x2), region = 78 }

</bundles_post_ra>
